<compile_context>
chip_gen: v7x
topology: tpu7x:2x2x1
jax: 0.10.0
libtpu: 0.0.40
codegen_flags: <defaults>
</compile_context>

<pallas_src>
import functools
import math

import jax
import jax.numpy as jnp
from jax.experimental import pallas as pl
from jax.experimental.pallas import tpu as pltpu

_F32_EPS = 1.1920929e-07  # torch.finfo(torch.float32).eps, used by clamp_probs


# ---------------------------------------------------------------------------
# Kernels (one per mode, specialized at trace time)
# ---------------------------------------------------------------------------
def _relaxed_bernoulli_kernel(u_ref, plogit_ref, z_ref, *, inv_temp):
    """Training path: RelaxedBernoulli (concrete) rsample.

    u_ref      : (SB, W*T) uniform noise in [0, 1)
    plogit_ref : (SB, W*T) log(pi_c) - log(1 - pi_c), pre-tiled over width
    z_ref      : (SB, W*T) output mask
    """
    feps = jnp.float32(_F32_EPS)
    u = jnp.clip(u_ref[...], feps, 1.0 - feps)                 # clamp_probs(rand)
    logit_u = jnp.log(u) - jnp.log1p(-u)
    z_ref[...] = jax.nn.sigmoid(
        (logit_u + plogit_ref[...]) * jnp.float32(inv_temp))


def _hard_bernoulli_kernel(u_ref, p_ref, z_ref):
    """Eval path: hard Bernoulli sample, Z = 1[u < pi]."""
    z_ref[...] = (u_ref[...] < p_ref[...]).astype(jnp.float32)


# ---------------------------------------------------------------------------
# Wrapper
# ---------------------------------------------------------------------------
def _pick_sample_block(num_samples, lane_width, budget_bytes=8 << 20):
    """Largest sample block (divisor of num_samples) fitting a VMEM budget.

    Per block we hold 3 f32 slabs (u, pi-term, z), double-buffered.
    """
    per_sample = 3 * lane_width * 4 * 2
    if num_samples * per_sample <= budget_bytes:
        return num_samples
    best = num_samples
    sb = 8
    while sb < num_samples:
        if num_samples % sb == 0 and sb * per_sample <= budget_bytes:
            best = sb
        sb += 8
    return best


def network_structure_sampler(a_k_param, b_k_param, key, *,
                              num_samples, max_width, temp, epsilon,
                              training=True, get_pi=False, reverse_pi=False):
    """JAX/Pallas equivalent of NetworkStructureSampler.forward()."""
    trunc = a_k_param.shape[0]
    lane = max_width * trunc                     # lane-dense output width

    # --- variational params + Beta rsample + stick-breaking pi (tiny, XLA) --
    a_k = jax.nn.softplus(a_k_param) + 0.01
    b_k = jax.nn.softplus(b_k_param) + 0.01
    key_nu, key_u = jax.random.split(key)
    # TODO(synk): forward values only -- PyTorch's Beta.rsample implicit-
    # reparameterization gradient is not reproduced here.
    nu = jax.random.beta(key_nu, a_k, b_k,
                         shape=(num_samples, trunc)).astype(jnp.float32)
    pi = jnp.exp(jnp.cumsum(jnp.log(nu), axis=1))             # (S, T)
    keep_prob = jnp.mean(pi, axis=0)                          # pi.detach().mean(0)

    feps = jnp.float32(_F32_EPS)
    if training:
        pi_c = jnp.clip(pi, feps, 1.0 - feps)                 # clamp_probs(probs)
        p_term = jnp.log(pi_c) - jnp.log1p(-pi_c)             # hoisted logit(pi)
    else:
        p_term = pi

    # Tile over the width dimension and present a lane-dense (S, W*T) slab.
    p_tiled = jnp.broadcast_to(p_term[:, None, :],
                               (num_samples, max_width, trunc))
    p_tiled = p_tiled.reshape(num_samples, lane).astype(jnp.float32)

    # Uniform noise for the whole batch in one shot (advancing jax.random
    # stream, analogous to torch.rand drawing from the global generator).
    u = jax.random.uniform(key_u, (num_samples, lane), dtype=jnp.float32)

    sb = _pick_sample_block(num_samples, lane)
    grid = (num_samples // sb,)

    if training:
        kernel = functools.partial(_relaxed_bernoulli_kernel,
                                   inv_temp=1.0 / float(temp))
    else:
        kernel = _hard_bernoulli_kernel

    z_flat = pl.pallas_call(
        kernel,
        out_shape=jax.ShapeDtypeStruct((num_samples, lane), jnp.float32),
        grid=grid,
        in_specs=[
            pl.BlockSpec((sb, lane), lambda i: (i, 0)),       # u
            pl.BlockSpec((sb, lane), lambda i: (i, 0)),       # pi term (tiled)
        ],
        out_specs=pl.BlockSpec((sb, lane), lambda i: (i, 0)), # Z
        compiler_params=pltpu.CompilerParams(
            dimension_semantics=("parallel",)),
    )(u, p_tiled)

    z = z_flat.reshape(num_samples, max_width, trunc)

    # --- threshold: layers with any activated neuron, max over samples ------
    active_per_layer = jnp.sum(
        (z > jnp.float32(epsilon)).astype(jnp.int32), axis=1)    # (S, T)
    thr_per_sample = jnp.sum(
        (active_per_layer > 0).astype(jnp.int32), axis=1)        # (S,)
    threshold = jnp.max(thr_per_sample)

    if reverse_pi:
        z = 1.0 - z
    if get_pi:
        return z, threshold, keep_prob
    return z, threshold


if __name__ == "__main__":
    # "args" of the PyTorch module (small, deterministic)
    truncation_level = 16
    max_width = 32
    num_samples = 5
    a_prior = 4.0
    b_prior = 1.0
    temp = 0.5
    epsilon = 0.01

    # deterministic parameter init, exactly as in __init__:
    # a_k = zeros + log(exp(a_prior) - 1), b_k = zeros + log(exp(b_prior) - 1)
    a_init = math.log(math.exp(a_prior) - 1.0)
    b_init = math.log(math.exp(b_prior) - 1.0)
    a_k_param = jnp.full((truncation_level,), a_init, dtype=jnp.float32)
    b_k_param = jnp.full((truncation_level,), b_init, dtype=jnp.float32)

    key = jax.random.PRNGKey(0)

    Z, threshold, keep_prob = network_structure_sampler(
        a_k_param, b_k_param, key,
        num_samples=num_samples, max_width=max_width,
        temp=temp, epsilon=epsilon,
        training=True, get_pi=True, reverse_pi=False,
    )
    jax.block_until_ready((Z, threshold, keep_prob))

    assert Z.shape == (num_samples, max_width, truncation_level)
    assert keep_prob.shape == (truncation_level,)
    assert 0 <= int(threshold) <= truncation_level
    assert bool(jnp.all(jnp.isfinite(Z)))
    assert bool(jnp.all((Z >= 0.0) & (Z <= 1.0)))

    # also exercise the eval (hard Bernoulli) kernel once
    Z_eval, thr_eval = network_structure_sampler(
        a_k_param, b_k_param, jax.random.PRNGKey(1),
        num_samples=num_samples, max_width=max_width,
        temp=temp, epsilon=epsilon,
        training=False, get_pi=False, reverse_pi=False,
    )
    jax.block_until_ready((Z_eval, thr_eval))
    assert Z_eval.shape == (num_samples, max_width, truncation_level)
    assert bool(jnp.all((Z_eval == 0.0) | (Z_eval == 1.0)))

    print("KERNEL_OK")
</pallas_src>

<mosaic_0001>
module attributes {stable_mosaic.version = 11 : i64} {
  func.func @_relaxed_bernoulli_kernel(%arg0: i32, %arg1: memref<5x512xf32, #tpu.memory_space<vmem>>, %arg2: memref<5x512xf32, #tpu.memory_space<vmem>>, %arg3: memref<5x512xf32, #tpu.memory_space<vmem>>) attributes {dimension_semantics = [#tpu.dimension_semantics<parallel>], iteration_bounds = array<i64: 1>, scalar_prefetch = 0 : i64, scratch_operands = 0 : i64, tpu.core_type = #tpu.core_type<tc>, window_params = [{transform_indices = @transform_0, window_bounds = array<i64: 5, 512>}, {transform_indices = @transform_1, window_bounds = array<i64: 5, 512>}, {transform_indices = @transform_2, window_bounds = array<i64: 5, 512>}]} {
    %c0 = arith.constant 0 : index
    %c0_0 = arith.constant 0 : index
    %0 = vector.load %arg1[%c0, %c0_0] : memref<5x512xf32, #tpu.memory_space<vmem>>, vector<5x512xf32>
    %cst = arith.constant 1.000000e+00 : f32
    %cst_1 = arith.constant 1.1920929E-7 : f32
    %1 = arith.subf %cst, %cst_1 : f32
    %cst_2 = arith.constant 1.1920929E-7 : f32
    %2 = vector.broadcast %cst_2 : f32 to vector<5x512xf32>
    %3 = arith.maximumf %2, %0 : vector<5x512xf32>
    %4 = vector.broadcast %1 : f32 to vector<5x512xf32>
    %5 = arith.minimumf %4, %3 : vector<5x512xf32>
    %6 = math.log %5 : vector<5x512xf32>
    %cst_3 = arith.constant 0.000000e+00 : f32
    %7 = vector.broadcast %cst_3 : f32 to vector<5x512xf32>
    %8 = arith.subf %7, %5 : vector<5x512xf32>
    %9 = math.log1p %8 : vector<5x512xf32>
    %10 = arith.subf %6, %9 : vector<5x512xf32>
    %c0_4 = arith.constant 0 : index
    %c0_5 = arith.constant 0 : index
    %11 = vector.load %arg2[%c0_4, %c0_5] : memref<5x512xf32, #tpu.memory_space<vmem>>, vector<5x512xf32>
    %12 = arith.addf %10, %11 : vector<5x512xf32>
    %cst_6 = arith.constant 2.000000e+00 : f32
    %13 = vector.broadcast %cst_6 : f32 to vector<5x512xf32>
    %14 = arith.mulf %12, %13 : vector<5x512xf32>
    %15 = arith.negf %14 : vector<5x512xf32>
    %16 = math.exp %15 : vector<5x512xf32>
    %cst_7 = arith.constant 1.000000e+00 : f32
    %17 = vector.broadcast %cst_7 : f32 to vector<5x512xf32>
    %18 = arith.addf %17, %16 : vector<5x512xf32>
    %19 = arith.divf %17, %18 : vector<5x512xf32>
    %c0_8 = arith.constant 0 : index
    %c0_9 = arith.constant 0 : index
    %20 = vector.load %arg3[%c0_8, %c0_9] : memref<5x512xf32, #tpu.memory_space<vmem>>, vector<5x512xf32>
    tpu.vector_store %arg3[%c0_8, %c0_9], %19 {strides = array<i32>} : memref<5x512xf32, #tpu.memory_space<vmem>>, vector<5x512xf32>,
    return
  }
  func.func @transform_0(%arg0: i32) -> (i32, i32) {
    %c0_i32 = arith.constant 0 : i32
    %c0_i32_0 = arith.constant 0 : i32
    return %arg0, %c0_i32 : i32, i32
  }
  func.func @transform_1(%arg0: i32) -> (i32, i32) {
    %c0_i32 = arith.constant 0 : i32
    %c0_i32_0 = arith.constant 0 : i32
    return %arg0, %c0_i32 : i32, i32
  }
  func.func @transform_2(%arg0: i32) -> (i32, i32) {
    %c0_i32 = arith.constant 0 : i32
    %c0_i32_0 = arith.constant 0 : i32
    return %arg0, %c0_i32 : i32, i32
  }
}

</mosaic_0001>

<bundles_post_ra>
// kernel: tpu_custom_call.1
= control target key start
LH: loop header
LB: loop body
LE: loop exit
PB: predicated region body
PF: predicated region fallthrough
CT: control target
= control target key end

     0   :  { %7 = vsyncpa [#allocation3], 0  ;;  %s339_s0 = inlined_call_operand.hbm [shape: f32[5,512], index: 0, kind: input, shape index: {}]   ;;  %s340_s1 = inlined_call_operand.hbm [shape: f32[5,512], index: 1, kind: input, shape index: {}]   ;;  %s341_s2 = inlined_call_operand.hbm [shape: f32[5,512], index: 2, kind: output, shape index: {}]  }
   0x1   :  { %8 = vsyncpa [#allocation6], 0 }
   0x2   :  { %9 = vsyncpa [#allocation4], 0  ;;  %s267_s9 = smov [#allocation2]   ;;  %s268_s11 = smov [#allocation5]  }
   0x3   :  { %s16_s10 = sshll.u32 %s267_s9, 4  ;;  %s26_s12 = sshll.u32 %s268_s11, 4  ;;  %s17_s10 = int_to_ptr.vmem [resolvable:$true] %s16_s10  ;;  %s27_s12 = int_to_ptr.vmem [resolvable:$true] %s26_s12 }
   0x4   :  { %s195_s15 = scalar_lea.hbm %s339_s0, 512 }
   0x5   :  { %p196_p0 = scmp.ne.s32.totalorder %s339_s0, %s195_s15  ;;  %p199_p1 = scmp.lt.u32.totalorder %s195_s15, %s339_s0 }
   0x7   :  { %p201_p2 = pnand %p199_p1, %p196_p0 }
   0x9   :  { %204 = shalt.err (!%p201_p2)
}
   0xa   :  { %s205_s20 = scalar_lea.vmem %s17_s10, 512  ;;  %p210_p4 = scmp.lt.s32.totalorder %s17_s10, %s17_s10 }
   0xb   :  { %p206_p3 = scmp.ne.s32.totalorder %s17_s10, %s205_s20  ;;  %p211_p5 = scmp.lt.s32.totalorder %s205_s20, %s205_s20 }
   0xd   :  { %p212_p6 = por %p211_p5, %p210_p4 }
   0xf   :  { %p213_p7 = pnand %p212_p6, %p206_p3 }
  0x11   :  { %216 = shalt.err (!%p213_p7)
}
  0x12   :  { %19 = dma.hbm_to_vmem [thread:$0]  %s339_s0, 512, %s17_s10, [#allocation3]  }
  0x13   :  { %s217_s25 = scalar_lea.hbm %s340_s1, 512 }
  0x14   :  { %p218_p8 = scmp.ne.s32.totalorder %s340_s1, %s217_s25  ;;  %p221_p9 = scmp.lt.u32.totalorder %s217_s25, %s340_s1 }
  0x16   :  { %p223_p10 = pnand %p221_p9, %p218_p8 }
  0x18   :  { %226 = shalt.err (!%p223_p10)
}
  0x19   :  { %s227_s30 = scalar_lea.vmem %s27_s12, 512  ;;  %p232_p12 = scmp.lt.s32.totalorder %s27_s12, %s27_s12 }
  0x1a   :  { %p228_p11 = scmp.ne.s32.totalorder %s27_s12, %s227_s30  ;;  %p233_p13 = scmp.lt.s32.totalorder %s227_s30, %s227_s30 }
  0x1c   :  { %p234_p0 = por %p233_p13, %p232_p12 }
  0x1e   :  { %p235_p1 = pnand %p234_p0, %p228_p11 }
  0x20   :  { %238 = shalt.err (!%p235_p1)
}
  0x21   :  { %29 = dma.hbm_to_vmem [thread:$0]  %s340_s1, 512, %s27_s12, [#allocation6]  }
  0x22   :  { %261 = dma.done.wait [#allocation3], 512  }
  0x23   :  { %262 = vsyncadd [#allocation3], 4294966784 }
  0x24   :  { %263 = dma.done.wait [#allocation6], 512  }
  0x25   :  { %264 = vsyncadd [#allocation6], 4294966784  ;;  %v36_v0 = vld [vmem:[#allocation2] sm:$0x1f]  ;;  %v37_v1 = vld [vmem:[#allocation2 + $0x8] sm:$0x1f] }
  0x26   :  { %v40_v2 = vmax.f32 %v36_v0, 1.1920929e-07  ;;  %v41_v3 = vmax.f32 %v37_v1, 1.1920929e-07  ;;  %v38_v4 = vld [vmem:[#allocation2 + $0x10] sm:$0x1f]  ;;  %v39_v6 = vld [vmem:[#allocation2 + $0x18] sm:$0x1f] }
  0x27   :  { %v42_v5 = vmax.f32 %v38_v4, 1.1920929e-07  ;;  %v43_v9 = vmax.f32 %v39_v6, 1.1920929e-07  ;;  %v100_v51 = vld [vmem:[#allocation5] sm:$0x1f]  ;;  %v101_v55 = vld [vmem:[#allocation5 + $0x8] sm:$0x1f] }
  0x28   :  { %v44_v7 = vmin.f32 %v40_v2, 0.9999999  ;;  %v45_v8 = vmin.f32 %v41_v3, 0.9999999  ;;  %v102_v58 = vld [vmem:[#allocation5 + $0x10] sm:$0x1f] }
  0x29   :  { %v46_v10 = vmin.f32 %v42_v5, 0.9999999  ;;  %v47_v16 = vmin.f32 %v43_v9, 0.9999999  ;;  %v103_v6 = vld [vmem:[#allocation5 + $0x18] sm:$0x1f] }
  0x2a   :  { %v56_v11 = vsub.f32 0.0, %v44_v7  ;;  %v57_v12 = vsub.f32 0.0, %v45_v8  ;;  %163 = vlog2.f32 %v44_v7  ;;  %s269_s1 = smov [#allocation7]  }
  0x2b   :  { %v58_v13 = vsub.f32 0.0, %v46_v10  ;;  %165 = vlog2.f32 %v45_v8  ;;  %v59_v20 = vsub.f32 0.0, %v47_v16  ;;  %s146_s4 = sshll.u32 %s269_s1, 4  ;;  %s147_s4 = int_to_ptr.vmem [resolvable:$true] %s146_s4 }
  0x2c   :  { %v60_v14 = vadd.f32 1.0, %v56_v11  ;;  %v69_v15 = vadd.f32 1.0, %v57_v12  ;;  %167 = vlog2.f32 %v46_v10  ;;  %v63_v18 = vmul.f32 -0.5, %v56_v11  ;;  %s239_s5 = scalar_lea.vmem %s147_s4, 512  ;;  %p244_p3 = scmp.lt.s32.totalorder %s147_s4, %s147_s4 }
  0x2d   :  { %v78_v17 = vadd.f32 1.0, %v58_v13  ;;  %v72_v19 = vmul.f32 -0.5, %v57_v12  ;;  %v81_v21 = vmul.f32 -0.5, %v58_v13  ;;  %v87_v22 = vadd.f32 1.0, %v59_v20  ;;  %p240_p2 = scmp.ne.s32.totalorder %s147_s4, %s239_s5  ;;  %p245_p4 = scmp.lt.s32.totalorder %s239_s5, %s239_s5 }
  0x2e   :  { %169 = vlog2.f32 %v60_v14  ;;  %v64_v23 = vadd.f32 1.0, %v63_v18  ;;  %v66_v24 = vand.u32 2147483647, %v56_v11  ;;  %v75_v26 = vand.u32 2147483647, %v57_v12 }
  0x2f   :  { %171 = vlog2.f32 %v69_v15  ;;  %v73_v25 = vadd.f32 1.0, %v72_v19  ;;  %v84_v27 = vand.u32 2147483647, %v58_v13  ;;  %v82_v29 = vadd.f32 1.0, %v81_v21  ;;  %p246_p5 = por %p245_p4, %p244_p3 }
  0x30   :  { %173 = vlog2.f32 %v78_v17  ;;  %v90_v30 = vmul.f32 -0.5, %v59_v20  ;;  %v65_v33 = vmul.f32 %v64_v23, %v56_v11  ;;  %vm309_vm0 = vcmp.lt.f32.partialorder %v66_v24, 0.0004427343 }
  0x31   :  { %175 = vlog2.f32 %v47_v16  ;;  %v74_v37 = vmul.f32 %v73_v25, %v57_v12  ;;  %vm313_vm1 = vcmp.lt.f32.partialorder %v75_v26, 0.0004427343  ;;  %vm317_vm2 = vcmp.lt.f32.partialorder %v84_v27, 0.0004427343  ;;  %p247_p6 = pnand %p246_p5, %p240_p2 }
  0x32   :  { %177 = vlog2.f32 %v87_v22  ;;  %v83_v43 = vmul.f32 %v82_v29, %v58_v13  ;;  %v91_v44 = vadd.f32 1.0, %v90_v30  ;;  %v93_v48 = vand.u32 2147483647, %v59_v20 }
  0x34   :  { %v164_v28 = vpop.eup %163  ;;  %v92_v59 = vmul.f32 %v91_v44, %v59_v20  ;;  %vm94_vm3 = vcmp.lt.f32.partialorder %v93_v48, 0.0004427343 }
  0x35   :  { %v166_v31 = vpop.eup %165  ;;  %v49_v36 = vmul.f32 0.6931472, %v164_v28 }
  0x36   :  { %v168_v32 = vpop.eup %167  ;;  %v51_v42 = vmul.f32 0.6931472, %v166_v31 }
  0x37   :  { %v53_v47 = vmul.f32 0.6931472, %v168_v32 }
  0x38   :  { %v170_v35 = vpop.eup %169 }
  0x39   :  { %v172_v40 = vpop.eup %171  ;;  %v62_v41 = vmul.f32 0.6931472, %v170_v35 }
  0x3a   :  { %v174_v45 = vpop.eup %173  ;;  %v71_v46 = vmul.f32 0.6931472, %v172_v40 }
  0x3b   :  { %v176_v49 = vpop.eup %175  ;;  %v68_v50 = vsel %vm309_vm0, %v65_v33, %v62_v41  ;;  %v80_v52 = vmul.f32 0.6931472, %v174_v45 }
  0x3c   :  { %v96_v53 = vsub.f32 %v49_v36, %v68_v50  ;;  %v77_v54 = vsel %vm313_vm1, %v74_v37, %v71_v46  ;;  %v178_v60 = vpop.eup %177  ;;  %v55_v63 = vmul.f32 0.6931472, %v176_v49 }
  0x3d   :  { %v97_v56 = vsub.f32 %v51_v42, %v77_v54  ;;  %v86_v57 = vsel %vm317_vm2, %v83_v43, %v80_v52  ;;  %v89_v1 = vmul.f32 0.6931472, %v178_v60 }
  0x3e   :  { %v104_v61 = vadd.f32 %v100_v51, %v96_v53  ;;  %v98_v62 = vsub.f32 %v53_v47, %v86_v57 }
  0x3f   :  { %v105_v0 = vadd.f32 %v101_v55, %v97_v56  ;;  %v95_v5 = vsel %vm94_vm3, %v92_v59, %v89_v1 }
  0x40   :  { %v156_v2 = vmul.f32 -2.0, %v104_v61  ;;  %v106_v3 = vadd.f32 %v102_v58, %v98_v62  ;;  %v99_v9 = vsub.f32 %v55_v63, %v95_v5 }
  0x41   :  { %v157_v4 = vmul.f32 -2.0, %v105_v0 }
  0x42   :  { %v116_v7 = vmul.f32 1.442695, %v156_v2  ;;  %v158_v8 = vmul.f32 -2.0, %v106_v3  ;;  %v107_v12 = vadd.f32 %v103_v6, %v99_v9 }
  0x43   :  { %v118_v10 = vmul.f32 1.442695, %v157_v4 }
  0x44   :  { %179 = vpow2.f32 %v116_v7  ;;  %v120_v11 = vmul.f32 1.442695, %v158_v8  ;;  %v159_v13 = vmul.f32 -2.0, %v107_v12 }
  0x45   :  { %181 = vpow2.f32 %v118_v10 }
  0x46   :  { %183 = vpow2.f32 %v120_v11  ;;  %v122_v14 = vmul.f32 1.442695, %v159_v13 }
  0x48   :  { %185 = vpow2.f32 %v122_v14 }
  0x4e   :  { %v180_v15 = vpop.eup %179 }
  0x4f   :  { %v182_v16 = vpop.eup %181  ;;  %v124_v17 = vadd.f32 1.0, %v180_v15 }
  0x50   :  { %v184_v18 = vpop.eup %183  ;;  %v125_v19 = vadd.f32 1.0, %v182_v16 }
  0x51   :  { %187 = vrcp.f32 %v124_v17  ;;  %v126_v20 = vadd.f32 1.0, %v184_v18 }
  0x52   :  { %189 = vrcp.f32 %v125_v19  ;;  %v186_v21 = vpop.eup %185 }
  0x53   :  { %191 = vrcp.f32 %v126_v20  ;;  %v127_v22 = vadd.f32 1.0, %v186_v21 }
  0x55   :  { %193 = vrcp.f32 %v127_v22 }
  0x5b   :  { %v188_v23 = vpop.eup %187 }
  0x5c   :  { %v190_v24 = vpop.eup %189  ;;  %136 = vst [vmem:[#allocation7] sm:$0x1f] %v188_v23 }
  0x5d   :  { %v192_v25 = vpop.eup %191  ;;  %137 = vst [vmem:[#allocation7 + $0x8] sm:$0x1f] %v190_v24 }
  0x5e   :  { %138 = vst [vmem:[#allocation7 + $0x10] sm:$0x1f] %v192_v25 }
  0x5f   :  { %v194_v26 = vpop.eup %193 }
  0x60   :  { %139 = vst [vmem:[#allocation7 + $0x18] sm:$0x1f] %v194_v26 }
  0x61   :  { %250 = shalt.err (!%p247_p6)
}
  0x62   :  { %s251_s8 = scalar_lea.hbm %s341_s2, 512 }
  0x63   :  { %p252_p7 = scmp.ne.s32.totalorder %s341_s2, %s251_s8  ;;  %p255_p8 = scmp.lt.u32.totalorder %s251_s8, %s341_s2 }
  0x65   :  { %p257_p9 = pnand %p255_p8, %p252_p7 }
  0x67   :  { %260 = shalt.err (!%p257_p9)
}
  0x68   :  { %149 = dma.vmem_to_hbm [thread:$0]  %s147_s4, 512, %s341_s2, [#allocation4]  }
  0x69   :  { %265 = dma.done.wait [#allocation4], 512  }
  0x6a   :  { %266 = vsyncadd [#allocation4], 4294966784 }
  0x6b   :  { %153 = vsyncpa [#allocation3], 1 }
  0x6c   :  { %154 = vsyncpa [#allocation6], 1 }
  0x6d   :  { %155 = vsyncpa [#allocation4], 1 }

</bundles_post_ra>
